<compile_context>
chip_gen: v7x
topology: tpu7x:2x2x1
jax: 0.10.0
libtpu: 0.0.40
codegen_flags: <defaults>
</compile_context>

<pallas_src>
import jax
import jax.numpy as jnp
from jax.experimental import pallas as pl
from jax.experimental.pallas import tpu as pltpu


def gcn_kernel(adj_ref, text_ref, wt_ref, bias_ref, out_ref):
    # adj_ref  : [Bt, N, N]     bf16 (or f32 on the exact path)
    # text_ref : [Bt, N, Din]   same dtype as adj
    # wt_ref   : [Din, Dout]    same dtype as adj
    # bias_ref : [1, Dout]      f32
    # out_ref  : [Bt, N, Dout]  f32
    adj = adj_ref[...]                      # stays bf16: MXU bf16xbf16 -> f32
    x = text_ref[...]

    bt, n, din = x.shape
    dout = wt_ref.shape[1]

    # Per-graph aggregation: agg[b] = adj[b] @ x[b]  (batched MXU, f32 acc).
    agg = jnp.einsum("bij,bjd->bid", adj, x,
                     preferred_element_type=jnp.float32)          # [Bt,N,Din] f32

    # Row degree + 1 with f32 accumulation straight from the bf16 block,
    # then approximate reciprocal on the EUP (separate bundle slot).
    deg = jnp.sum(adj, axis=-1, keepdims=True, dtype=jnp.float32) + 1.0
    inv = pl.reciprocal(deg, approx=True)                          # [Bt,N,1]

    w = wt_ref[...]                                                # [Din,Dout]
    b = bias_ref[...]                                              # [1,Dout]

    # Apply the (linear) normalization on the narrower operand; project once
    # per step as a tall [Bt*N, Din] matmul in the wire dtype, f32 accumulation.
    if din <= dout:
        h = (agg * inv).reshape(bt * n, din).astype(w.dtype)
        y = jnp.dot(h, w, preferred_element_type=jnp.float32)      # [Bt*N,Dout]
        y = y.reshape(bt, n, dout) + b
    else:
        y = jnp.dot(agg.reshape(bt * n, din).astype(w.dtype), w,
                    preferred_element_type=jnp.float32)
        y = y.reshape(bt, n, dout) * inv + b
    out_ref[...] = y.astype(out_ref.dtype)


def _round_up(x, m):
    return ((x + m - 1) // m) * m


def _vmem_limit_bytes():
    """Generation-aware scoped-VMEM limit: ~72% of physical per-core VMEM
    (v5e/v6e: 128 MiB -> ~92 MiB, v7x: 64 MiB -> ~46 MiB).  Conservative
    fallback if the query is unavailable."""
    try:
        cap = int(pltpu.get_tpu_info().vmem_capacity_bytes)
    except Exception:
        cap = 0
    if cap <= 0:
        return 48 * 1024 * 1024
    return int(cap * 0.72)


def _pick_block_b(B, N, Din, Dout, vmem_limit, in_bytes):
    """Graphs per grid step, sized from the VMEM budget.

    Targets ~1024 aggregated rows (Bt*N) per step, keeps the pipelined blocks
    (double-buffered adj/text/out + weights) under ~half the scoped limit, and
    keeps >=4 grid steps when B allows (>=2 steps per TensorCore on v7x)."""
    per_graph = 2 * (N * N * in_bytes + N * Din * in_bytes + N * Dout * 4)
    fixed = 2 * (Din * Dout * in_bytes + Dout * 4)
    budget = max(vmem_limit // 2 - fixed, per_graph)
    bt_cap = max(1, budget // per_graph)

    target_rows = 1024
    bt = min(B, int(bt_cap), max(1, target_rows // max(N, 1)))
    if B >= 4:
        bt = min(bt, B // 4)      # >=4 grid steps -> overlap survives megacore
    elif B >= 2:
        bt = min(bt, B // 2)
    bt = max(1, bt)
    while B % bt:
        bt -= 1
    return bt


def graph_convolution(text, adj, weight, bias, *, block_b=None, bf16_inputs=True):
    """text: [B, N, Din], adj: [B, N, N], weight: [Dout, Din], bias: [Dout].

    bf16_inputs: ship adjacency/text/W^T as bf16 (exact for binary/bool
    adjacency; text/W round to bf16 with f32 accumulation).  Set False for
    bit-accurate f32 operands (weighted graphs / strict parity)."""
    B, N, Din = text.shape
    Dout = weight.shape[0]

    # Pad N to the f32 sublane granularity so in-kernel (Bt,N,*) <-> (Bt*N,*)
    # reshapes are layout-free views.  Padded rows have degree 0 -> output is
    # just the bias there; they are sliced off below (no-op when N % 8 == 0).
    Np = _round_up(N, 8)
    if Np != N:
        adj = jnp.pad(adj, ((0, 0), (0, Np - N), (0, Np - N)))
        text = jnp.pad(text, ((0, 0), (0, Np - N), (0, 0)))

    in_dt = jnp.bfloat16 if bf16_inputs else jnp.float32
    in_bytes = 2 if bf16_inputs else 4
    adj_in = adj.astype(in_dt)
    text_in = text.astype(in_dt)
    wt = weight.T.astype(in_dt)                               # [Din, Dout]
    bias_in = bias.astype(jnp.float32).reshape(1, Dout)       # [1, Dout]

    vmem_limit = _vmem_limit_bytes()
    Bt = block_b if block_b is not None else _pick_block_b(
        B, Np, Din, Dout, vmem_limit, in_bytes)
    assert B % Bt == 0, "block_b must divide the batch size"

    out = pl.pallas_call(
        gcn_kernel,
        out_shape=jax.ShapeDtypeStruct((B, Np, Dout), jnp.float32),
        grid_spec=pltpu.PrefetchScalarGridSpec(
            num_scalar_prefetch=0,
            grid=(B // Bt,),
            in_specs=[
                pl.BlockSpec((Bt, Np, Np), lambda b: (b, 0, 0)),    # adj tile
                pl.BlockSpec((Bt, Np, Din), lambda b: (b, 0, 0)),   # text tile
                pl.BlockSpec((Din, Dout), lambda b: (0, 0)),        # W^T (shared)
                pl.BlockSpec((1, Dout), lambda b: (0, 0)),          # bias (shared)
            ],
            out_specs=pl.BlockSpec((Bt, Np, Dout), lambda b: (b, 0, 0)),
        ),
        compiler_params=pltpu.CompilerParams(
            dimension_semantics=("parallel",),
            vmem_limit_bytes=vmem_limit,
        ),
    )(adj_in, text_in, wt, bias_in)

    if Np != N:
        out = out[:, :N, :]
    return out


def _reference(text, adj, weight, bias):
    adj_f = adj.astype(jnp.float32)
    h = jnp.matmul(adj_f, text)
    h = h / (jnp.sum(adj_f, axis=-1, keepdims=True) + 1.0)
    return jnp.matmul(h, weight.T) + bias


if __name__ == "__main__":
    B, N = 8, 16
    in_features, out_features = 32, 64

    key = jax.random.PRNGKey(0)
    k_text, k_adj, k_w, k_b = jax.random.split(key, 4)

    text = jax.random.normal(k_text, (B, N, in_features), dtype=jnp.float32)
    # Binary adjacency (values in {0, 1}) -> exact in bf16.
    adj = (jax.random.uniform(k_adj, (B, N, N)) > 0.5).astype(jnp.float32)

    # Deterministic nn.Linear-style init: U(-1/sqrt(in), 1/sqrt(in)).
    bound = 1.0 / (in_features ** 0.5)
    weight = jax.random.uniform(
        k_w, (out_features, in_features), minval=-bound, maxval=bound,
        dtype=jnp.float32)
    bias = jax.random.uniform(
        k_b, (out_features,), minval=-bound, maxval=bound, dtype=jnp.float32)

    ref = _reference(text, adj, weight, bias)

    # Fast path: bf16 operands on the MXU, f32 accumulation, approx reciprocal.
    out = graph_convolution(text, adj, weight, bias)
    out = jax.block_until_ready(out)
    assert out.shape == (B, N, out_features)
    assert jnp.allclose(out, ref, atol=3e-2, rtol=2e-2), \
        "bf16 fast path mismatch vs reference"

    # Exact-operand path (f32 on the wire); only the approx EUP reciprocal
    # differs from the PyTorch division.
    out_exact = graph_convolution(text, adj, weight, bias, bf16_inputs=False)
    out_exact = jax.block_until_ready(out_exact)
    assert jnp.allclose(out_exact, ref, atol=5e-3, rtol=5e-3), \
        "f32 path mismatch vs reference"

    print("KERNEL_OK")
</pallas_src>

<mosaic_0001>
module attributes {stable_mosaic.version = 11 : i64} {
  func.func @gcn_kernel(%arg0: i32, %arg1: memref<2x16x16xbf16, #tpu.memory_space<vmem>>, %arg2: memref<2x16x32xbf16, #tpu.memory_space<vmem>>, %arg3: memref<32x64xbf16, #tpu.memory_space<vmem>>, %arg4: memref<1x64xf32, #tpu.memory_space<vmem>>, %arg5: memref<2x16x64xf32, #tpu.memory_space<vmem>>) attributes {dimension_semantics = [#tpu.dimension_semantics<parallel>], iteration_bounds = array<i64: 4>, scalar_prefetch = 0 : i64, scratch_operands = 0 : i64, tpu.core_type = #tpu.core_type<tc>, window_params = [{transform_indices = @transform_0, window_bounds = array<i64: 2, 16, 16>}, {transform_indices = @transform_1, window_bounds = array<i64: 2, 16, 32>}, {pipeline_mode = #tpu.pipeline_mode<synchronous>, transform_indices = @transform_2, window_bounds = array<i64: 32, 64>}, {pipeline_mode = #tpu.pipeline_mode<synchronous>, transform_indices = @transform_3, window_bounds = array<i64: 1, 64>}, {transform_indices = @transform_4, window_bounds = array<i64: 2, 16, 64>}]} {
    %c0 = arith.constant 0 : index
    %c0_0 = arith.constant 0 : index
    %c0_1 = arith.constant 0 : index
    %0 = vector.load %arg1[%c0, %c0_0, %c0_1] : memref<2x16x16xbf16, #tpu.memory_space<vmem>>, vector<2x16x16xbf16>
    %c0_2 = arith.constant 0 : index
    %c0_3 = arith.constant 0 : index
    %c0_4 = arith.constant 0 : index
    %1 = vector.load %arg2[%c0_2, %c0_3, %c0_4] : memref<2x16x32xbf16, #tpu.memory_space<vmem>>, vector<2x16x32xbf16>
    "tpu.trace_start"() <{level = 10 : i32, message = "bij,bjd->bid"}> : () -> ()
    %cst = arith.constant dense<0.000000e+00> : vector<2x16x32xf32>
    %2 = tpu.matmul %0, %1, %cst {dimension_numbers = #tpu.dot_dimension_numbers<[2], [1], [1], [2], [0, 0, 0, 1, 1, 2], [0], [0]>} : vector<2x16x16xbf16>, vector<2x16x32xbf16>, vector<2x16x32xf32> -> vector<2x16x32xf32>
    "tpu.trace_stop"() : () -> ()
    %3 = arith.extf %0 : vector<2x16x16xbf16> to vector<2x16x16xf32>
    %cst_5 = arith.constant dense<0.000000e+00> : vector<2x16xf32>
    %4 = vector.multi_reduction <add>, %3, %cst_5 [2] : vector<2x16x16xf32> to vector<2x16xf32>
    %5 = vector.shape_cast %4 : vector<2x16xf32> to vector<2x16x1xf32>
    %cst_6 = arith.constant 1.000000e+00 : f32
    %6 = vector.broadcast %cst_6 : f32 to vector<2x16x1xf32>
    %7 = arith.addf %5, %6 : vector<2x16x1xf32>
    %8 = tpu.reciprocal %7 {approx = true} : vector<2x16x1xf32> -> vector<2x16x1xf32>
    %c0_7 = arith.constant 0 : index
    %c0_8 = arith.constant 0 : index
    %9 = vector.load %arg3[%c0_7, %c0_8] : memref<32x64xbf16, #tpu.memory_space<vmem>>, vector<32x64xbf16>
    %c0_9 = arith.constant 0 : index
    %c0_10 = arith.constant 0 : index
    %10 = vector.load %arg4[%c0_9, %c0_10] : memref<1x64xf32, #tpu.memory_space<vmem>>, vector<1x64xf32>
    %11 = vector.broadcast %8 : vector<2x16x1xf32> to vector<2x16x32xf32>
    %12 = arith.mulf %2, %11 : vector<2x16x32xf32>
    %13 = vector.shape_cast %12 : vector<2x16x32xf32> to vector<32x32xf32>
    %14 = arith.truncf %13 : vector<32x32xf32> to vector<32x32xbf16>
    %cst_11 = arith.constant dense<0.000000e+00> : vector<32x64xf32>
    %15 = tpu.matmul %14, %9, %cst_11 {dimension_numbers = #tpu.dot_dimension_numbers<[1], [0], [0], [1], [0, 0, 1, 1], [], []>} : vector<32x32xbf16>, vector<32x64xbf16>, vector<32x64xf32> -> vector<32x64xf32>
    %16 = vector.shape_cast %15 : vector<32x64xf32> to vector<2x16x64xf32>
    %17 = vector.shape_cast %10 : vector<1x64xf32> to vector<1x1x64xf32>
    %18 = vector.broadcast %17 : vector<1x1x64xf32> to vector<2x16x64xf32>
    %19 = arith.addf %16, %18 : vector<2x16x64xf32>
    %c0_12 = arith.constant 0 : index
    %c0_13 = arith.constant 0 : index
    %c0_14 = arith.constant 0 : index
    %20 = vector.load %arg5[%c0_12, %c0_13, %c0_14] : memref<2x16x64xf32, #tpu.memory_space<vmem>>, vector<2x16x64xf32>
    tpu.vector_store %arg5[%c0_12, %c0_13, %c0_14], %19 {strides = array<i32>} : memref<2x16x64xf32, #tpu.memory_space<vmem>>, vector<2x16x64xf32>,
    return
  }
  func.func @transform_0(%arg0: i32) -> (i32, i32, i32) {
    %c0_i32 = arith.constant 0 : i32
    %c0_i32_0 = arith.constant 0 : i32
    %c0_i32_1 = arith.constant 0 : i32
    return %arg0, %c0_i32, %c0_i32_0 : i32, i32, i32
  }
  func.func @transform_1(%arg0: i32) -> (i32, i32, i32) {
    %c0_i32 = arith.constant 0 : i32
    %c0_i32_0 = arith.constant 0 : i32
    %c0_i32_1 = arith.constant 0 : i32
    return %arg0, %c0_i32, %c0_i32_0 : i32, i32, i32
  }
  func.func @transform_2(%arg0: i32) -> (i32, i32) {
    %c0_i32 = arith.constant 0 : i32
    %c0_i32_0 = arith.constant 0 : i32
    %c0_i32_1 = arith.constant 0 : i32
    return %c0_i32, %c0_i32_0 : i32, i32
  }
  func.func @transform_3(%arg0: i32) -> (i32, i32) {
    %c0_i32 = arith.constant 0 : i32
    %c0_i32_0 = arith.constant 0 : i32
    %c0_i32_1 = arith.constant 0 : i32
    return %c0_i32, %c0_i32_0 : i32, i32
  }
  func.func @transform_4(%arg0: i32) -> (i32, i32, i32) {
    %c0_i32 = arith.constant 0 : i32
    %c0_i32_0 = arith.constant 0 : i32
    %c0_i32_1 = arith.constant 0 : i32
    return %arg0, %c0_i32, %c0_i32_0 : i32, i32, i32
  }
}

</mosaic_0001>

<bundles_post_ra>
// kernel: tpu_custom_call.1
= control target key start
LH: loop header
LB: loop body
LE: loop exit
PB: predicated region body
PF: predicated region fallthrough
CT: control target
= control target key end

     0   :  { %s1232_s0 = inlined_call_operand.hbm [shape: bf16[8,16,16], index: 0, kind: input, shape index: {}]   ;;  %s1233_s1 = inlined_call_operand.hbm [shape: bf16[8,16,32], index: 1, kind: input, shape index: {}]   ;;  %s1234_s2 = inlined_call_operand.hbm [shape: bf16[32,64], index: 2, kind: input, shape index: {}]   ;;  %s1235_s3 = inlined_call_operand.vmem [shape: f32[1,64], index: 3, kind: input, shape index: {}]   ;;  %s1236_s4 = inlined_call_operand.hbm [shape: f32[8,16,64], index: 4, kind: output, shape index: {}]  }
   0x1   :  { %1244 = sst [smem:[#allocation14_spill]] %s1232_s0 }
   0x2   :  { %1245 = sst [smem:[#allocation15_spill]] %s1234_s2 }
   0x3   :  { %9 = vsyncpa [#allocation3], 0 }
   0x4   :  { %11 = vsyncpa [#allocation3 + $0x1], 0 }
   0x5   :  { %12 = vsyncpa [#allocation6], 0 }
   0x6   :  { %14 = vsyncpa [#allocation6 + $0x1], 0 }
   0x7   :  { %15 = vsyncpa [#allocation4], 0 }
   0x8   :  { %17 = vsyncpa [#allocation4 + $0x1], 0  ;;  %s984_s15 = smov 0   ;;  %s986_s16 = smov 0  }
   0x9   :  { %s988_s17 = smov 0   ;;  %s990_s18 = smov 0  }
   0xa LB: > { %s1005_s19 = sadd.s32 4294967295, %s947_s18   ;;  %s633_s20 = sadd.s32 4294967294, %s947_s18   ;;  %s947_s18 = sphi %s990_s18, %s1267_s18   ;;  %s943_s17 = sphi %s988_s17, %s1266_s17   ;;  %s939_s16 = sphi %s986_s16, %s1265_s16   ;;  %s935_s15 = sphi %s984_s15, %s1264_s15  }
   0xb   : > { %p43_p0 = scmp.ne.s32.totalorder %s939_s16, %s935_s15  ;;  %p1237_p1 = scmp.eq.s32.totalorder %s1005_s19, 0 }
   0xc   : > { %p141_p3 = scmp.eq.s32.totalorder %s633_s20, 3  ;;  %p634_p5 = scmp.ge.s32.totalorder %s947_s18, 1 }
   0xd   : > { %p1014_p4 = por %p1237_p1, %p43_p0  ;;  %p148_p7 = scmp.lt.s32.totalorder %s947_s18, 5 }
   0xe   : > { %p1019_p6 = por %p141_p3, %p43_p0  ;;  %s949_s24 = smov [#allocation7]  }
   0xf   : > { %s1246_s21 = scalar_select %p1014_p4, 1, 0 }
  0x10   : > { %s1247_s22 = scalar_select %p1019_p6, 1, 0 }
  0x11   : > { %p1024_p8 = pnand %p634_p5, %p148_p7  ;;  %s160_s25 = sshll.u32 %s949_s24, 4  ;;  %s161_s25 = int_to_ptr.vmem [resolvable:$true] %s160_s25 }
  0x12   : > { %s1037_s27 = sadd.s32 1, %s947_s18   ;;  %s30_s28 = sadd.s32 1, %s943_s17 }
  0x13   : > { %s1248_s23 = scalar_select %p1024_p8, 1, 0 }
  0x14   : > { %p711_p9 = pneg %p1024_p8  ;;  %s27_s29 = ssub.s32 %s947_s18, %s1037_s27 }
  0x15   : > { %s1250_s2 = sld [smem:[#allocation15_spill]] }
  0x16   : > { %p1032_p10 = pnand %p711_p9, %p1237_p1 }
  0x18   : > { %p787_p12 = pneg %p1032_p10 }
  0x1b   : > { %s785_s6 = scalar_lea.hbm %s1250_s2, 256 }
  0x1c   : > { %p786_p11 = scmp.ne.s32.totalorder %s1250_s2, %s785_s6  ;;  %p792_p3 = scmp.lt.u32.totalorder %s785_s6, %s1250_s2 }
  0x1e   : > { %p788_p13 = pnand %p787_p12, %p786_p11 }
  0x20   : > { %p789_p0 = pneg %p788_p13 }
  0x22   : > { %p794_p5 = pnand %p792_p3, %p789_p0 }
  0x24   : > { %797 = shalt.err (!%p794_p5)
}
  0x25   : > { %s798_s11 = scalar_lea.vmem %s161_s25, 256  ;;  %p806_p2 = scmp.lt.s32.totalorder %s161_s25, %s161_s25 }
  0x26   : > { %p799_p7 = scmp.ne.s32.totalorder %s161_s25, %s798_s11  ;;  %p807_p6 = scmp.lt.s32.totalorder %s798_s11, %s798_s11 }
  0x28   : > { %p801_p9 = pnand %p799_p7, %p787_p12  ;;  %p808_p4 = por %p807_p6, %p806_p2 }
  0x2a   : > { %p802_p1 = pneg %p801_p9 }
  0x2c   : > { %p809_p8 = pnand %p808_p4, %p802_p1 }
  0x2e   : > { %812 = shalt.err (!%p809_p8)
}
  0x2f   : > { %s1240_s12 = smov 64   ;;  %s1242_s13 = smov 4  }
  0x30   : > { %714 = dma.hbm_to_vmem [thread:$0]  (!%p1032_p10), %s1250_s2, 256, %s161_s25, [#allocation6], %s1240_s12, %s1240_s12, %s1242_s13  }
  0x31   : > { %p28_p1 = scmp.eq.s32.totalorder %s27_s29, 0  ;;  %p37_p2 = scmp.ne.s32.totalorder %s943_s17, %s939_s16 }
  0x32   : > { %p38_p4 = scmp.eq.s32.totalorder %s947_s18, 0  ;;  %p727_p6 = scmp.lt.s32.totalorder %s947_s18, 4 }
  0x33   : > { %s1066_s24 = scalar_select %p28_p1, %s943_s17, %s30_s28  }
  0x34   : > { %p39_p8 = por %p38_p4, %p37_p2  ;;  %p1252_p11 = scmp.eq.s32.totalorder %s1005_s19, 3 }
  0x35   : > { %1251 = sst [smem:[#allocation13_spill]] %s1066_s24  ;;  %s177_s26 = sand.u32 1, %s943_s17  }
  0x36   : > { %p1070_p12 = por %p1252_p11, %p37_p2  ;;  %s668_s5 = sshll.u32 %s947_s18, 8 }
  0x37   : > { %s1076_s6 = sshll.u32 %s177_s26, 4  ;;  %s1254_s0 = sld [smem:[#allocation14_spill]] }
  0x38   : > { %s181_s28 = scalar_lea.vmem [#allocation2], %s1076_s6  ;;  %p1084_p10 = pnand %p727_p6, %p39_p8 }
  0x39   : > { %s189_s29 = sshll.u32 %s181_s28, 4  ;;  %s1093_s14 = scalar_lea.hbm %s1233_s1, %s668_s5  ;;  %s1088_s29 = int_to_ptr.vmem [resolvable:$true] %s189_s29 }
  0x3a   : > { %s1095_s20 = scalar_lea.sflag [#allocation3], %s177_s26  ;;  %p815_p0 = pneg %p1084_p10 }
  0x3d   : > { %s1081_s25 = scalar_lea.hbm %s1254_s0, %s668_s5  ;;  %s818_s12 = scalar_lea.hbm %s1254_s0, 1024 }
  0x3e   : > { %s813_s7 = scalar_lea.hbm %s1081_s25, 256  ;;  %p819_p7 = scmp.lt.u32.totalorder %s1081_s25, %s1254_s0 }
  0x3f   : > { %p814_p13 = scmp.ne.s32.totalorder %s1081_s25, %s813_s7  ;;  %p820_p9 = scmp.lt.u32.totalorder %s818_s12, %s813_s7 }
  0x40   : > { %p822_p2 = scmp.lt.u32.totalorder %s813_s7, %s1081_s25 }
  0x41   : > { %p816_p3 = pnand %p815_p0, %p814_p13  ;;  %p821_p1 = por %p820_p9, %p819_p7 }
  0x43   : > { %p817_p5 = pneg %p816_p3  ;;  %p823_p4 = por %p822_p2, %p821_p1 }
  0x45   : > { %p824_p6 = pnand %p823_p4, %p817_p5 }
  0x47   : > { %827 = shalt.err (!%p824_p6)
}
  0x48   : > { %s828_s26 = scalar_lea.vmem %s1088_s29, 256  ;;  %s952_s5 = smov [#allocation2]  }
  0x49   : > { %p829_p8 = scmp.ne.s32.totalorder %s1088_s29, %s828_s26  ;;  %s833_s10 = sshll.u32 %s952_s5, 4  ;;  %s834_s10 = int_to_ptr.vmem [resolvable:$false] %s833_s10 }
  0x4a   : > { %s835_s2 = scalar_lea.vmem %s834_s10, 512  ;;  %p836_p3 = scmp.lt.s32.totalorder %s1088_s29, %s834_s10 }
  0x4b   : > { %p831_p11 = pnand %p829_p8, %p815_p0  ;;  %p837_p7 = scmp.lt.s32.totalorder %s835_s2, %s828_s26 }
  0x4d   : > { %p832_p13 = pneg %p831_p11  ;;  %p838_p9 = por %p837_p7, %p836_p3 }
  0x4f   : > { %p839_p1 = pnand %p838_p9, %p832_p13 }
  0x51   : > { %842 = shalt.err (!%p839_p1)
}
  0x52   : > { %s1256_s12 = smov 4   ;;  %s1257_s13 = smov 64  }
  0x53   : > { %718 = dma.hbm_to_vmem [thread:$0]  (!%p1084_p10), %s1081_s25, 256, %s1088_s29, %s1095_s20, %s1257_s13, %s1257_s13, %s1256_s12  }
  0x54   : > { %s203_s11 = scalar_lea.vmem [#allocation5], %s1076_s6  ;;  %s199_s8 = sand.u32 1, %s947_s18  }
  0x55   : > { %s211_s7 = sshll.u32 %s203_s11, 4  ;;  %s1130_s28 = scalar_lea.sflag [#allocation6], %s199_s8  ;;  %s1128_s7 = int_to_ptr.vmem [resolvable:$true] %s211_s7 }
  0x56   : > { %s843_s26 = scalar_lea.hbm %s1093_s14, 256  ;;  %s848_s2 = scalar_lea.hbm %s1233_s1, 1024 }
  0x57   : > { %p844_p5 = scmp.ne.s32.totalorder %s1093_s14, %s843_s26  ;;  %p849_p6 = scmp.lt.u32.totalorder %s1093_s14, %s1233_s1 }
  0x58   : > { %p850_p8 = scmp.lt.u32.totalorder %s848_s2, %s843_s26  ;;  %p852_p13 = scmp.lt.u32.totalorder %s843_s26, %s1093_s14 }
  0x59   : > { %p846_p2 = pnand %p844_p5, %p815_p0 }
  0x5a   : > { %p851_p11 = por %p850_p8, %p849_p6 }
  0x5b   : > { %p847_p4 = pneg %p846_p2 }
  0x5c   : > { %p853_p3 = por %p852_p13, %p851_p11 }
  0x5e   : > { %p854_p7 = pnand %p853_p3, %p847_p4 }
  0x60   : > { %857 = shalt.err (!%p854_p7)
}
  0x61   : > { %s858_s6 = scalar_lea.vmem %s1128_s7, 256  ;;  %s953_s25 = smov [#allocation5]  }
  0x62   : > { %p859_p9 = scmp.ne.s32.totalorder %s1128_s7, %s858_s6  ;;  %s863_s29 = sshll.u32 %s953_s25, 4  ;;  %s864_s29 = int_to_ptr.vmem [resolvable:$false] %s863_s29 }
  0x63   : > { %s865_s0 = scalar_lea.vmem %s864_s29, 512  ;;  %p866_p2 = scmp.lt.s32.totalorder %s1128_s7, %s864_s29 }
  0x64   : > { %p861_p1 = pnand %p859_p9, %p815_p0  ;;  %p867_p6 = scmp.lt.s32.totalorder %s865_s0, %s858_s6 }
  0x66   : > { %p862_p5 = pneg %p861_p1  ;;  %p868_p8 = por %p867_p6, %p866_p2 }
  0x68   : > { %p869_p11 = pnand %p868_p8, %p862_p5 }
  0x6a   : > { %872 = shalt.err (!%p869_p11)
}
  0x6b   : > { %721 = dma.hbm_to_vmem [thread:$0]  (!%p1084_p10), %s1093_s14, 256, %s1128_s7, %s1130_s28, %s1257_s13, %s1257_s13, %s1256_s12  }
  0x6c   : > { %p1258_p0 = scmp.ne.s32.totalorder %s1248_s23, 0 }
  0x6d   : > { %s1162_s24 = sand.u32 (!%p1258_p0), 1, %s939_s16   ;;  %p1259_p4 = scmp.ne.s32.totalorder (!%p1258_p0), %s1246_s21, 0 }
  0x6e   : > { %223 = sbr.rel (%p1258_p0) target bundleno = 581 (0x245), region = 36  ;;  %s646_s20 = sshll.u32 (!%p1258_p0), %s1162_s24, 4 }
  0x6f   : > { %s226_s11 = scalar_lea.sflag (!%p1258_p0), [#allocation3], %s1162_s24  ;;  %s229_s8 = scalar_lea.vmem (!%p1258_p0), [#allocation2], %s646_s20 }
  0x75   : > { %918 = dma.done.wait (%p1259_p4), %s226_s11, 256  }
  0x76   : > { %920 = vsyncadd (%p1259_p4), %s226_s11, 4294967040  ;;  %s234_s9 = sand.u32 1, %s1005_s19   ;;  %s238_s23 = scalar_lea.vmem [#allocation5], %s646_s20 }
  0x77   : > { %s235_s14 = scalar_lea.sflag [#allocation6], %s234_s9 }
  0x78   : > { %922 = dma.done.wait (%p1259_p4), %s235_s14, 256  }
  0x79   : > { %924 = vsyncadd (%p1259_p4), %s235_s14, 4294967040  ;;  %p1260_p10 = scmp.eq.s32.totalorder %s1005_s19, 0 }
  0x7b   : > { %926 = dma.done.wait (%p1260_p10), [#allocation6], 256   ;;  %p1261_p13 = pmov %p1260_p10 }
  0x7c   : > { %v954_v0 = vmov 0.0   ;;  %vm955_vm0 = vmmov 0   ;;  %v769_v1 = vld [vmem:[%s238_s23] sm:$0xff]   ;;  %v770_v2 = vld [vmem:[%s238_s23 + $0x8] sm:$0xff]   ;;  %vm295_vm1 = vcmask 130048   ;;  %vm442_vm2 = vcmask 261120  }
  0x7d   : > { %928 = vsyncadd (%p1261_p13), [#allocation6], 4294967040  ;;  %681 = vmatprep.subr.bf16.mxu0 %v954_v0  ;;  %687 = vmatprep.subr.bf16.mxu1 %v954_v0  ;;  %v276_v3 = vld [vmem:[%s229_s8] sm:$0xff]   ;;  %v278_v4 = vld [vmem:[%s229_s8 + $0x8] sm:$0xff]   ;;  %s649_s21 = sshll.u32 %s1162_s24, 5  ;;  %vm508_vm3 = vcmask 523264  }
  0x7e   : > { %683 = vmatprep.mubr.msk.bf16.mxu0 %vm955_vm0, %v954_v0  ;;  %689 = vmatprep.mubr.msk.bf16.mxu1 %vm955_vm0, %v954_v0  ;;  %v397_v5 = vunpack.c.l.bf16 %v278_v4  ;;  %v395_v6 = vunpack.c.l.bf16 %v276_v3  ;;  %v398_v7 = vunpack.c.h.bf16 %v278_v4  ;;  %v396_v8 = vunpack.c.h.bf16 %v276_v3  ;;  %v773_v13 = vld [vmem:[#allocation7] sm:$0xff]   ;;  %v774_v14 = vld [vmem:[#allocation7 + $0x8] sm:$0xff]   ;;  %s271_s7 = scalar_lea.vmem [#allocation8], %s649_s21  ;;  %s672_s26 = sshll.u32 %s1005_s19, 9 }
  0x7f   : > { %682 = vmatpush3.bf16.msra.mxu0 %v769_v1  ;;  %688 = vmatpush3.bf16.msra.mxu1 %v770_v2  ;;  %v660_v41 = vld [vmem:[%s1235_s3] ss:$0 sm:$0xff]  ;;  %s528_s28 = sshll.u32 %s271_s7, 4  ;;  %s1189_s2 = scalar_lea.hbm %s1236_s4, %s672_s26  ;;  %s1184_s28 = int_to_ptr.vmem [resolvable:$true] %s528_s28 }
  0x80   : > { %v405_v9 = vsel %vm295_vm1, %v397_v5, 0.0  ;;  %v399_v10 = vsel %vm295_vm1, %v395_v6, 0.0  ;;  %v408_v11 = vsel %vm295_vm1, %v398_v7, 0.0  ;;  %v402_v12 = vsel %vm295_vm1, %v396_v8, 0.0  ;;  %693 = vmatprep.subr.bf16.mxu0 %v773_v13  ;;  %s514_s19 = scalar_lea.sflag [#allocation4], %s1162_s24  ;;  %s873_s6 = scalar_lea.vmem %s1184_s28, 512 }
  0x81   : > { %406 = vadd.xlane.f32.xlu1 %v405_v9  ;;  %400 = vadd.xlane.f32.xlu0 %v399_v10  ;;  %p874_p3 = scmp.ne.s32.totalorder %s1184_s28, %s873_s6  ;;  %s956_s25 = smov [#allocation8]  }
  0x82   : > { %684 = vmatmul.mubr.msk.bf16.vlgmr.msra.gmra.mrb[0].mxu0 %vm295_vm1, %v276_v3  ;;  %690 = vmatmul.mubr.msk.bf16.vlgmr.msra.gmra.mrb[0].mxu1 %vm295_vm1, %v278_v4  ;;  %s877_s29 = sshll.u32 %s956_s25, 4  ;;  %s878_s29 = int_to_ptr.vmem [resolvable:$false] %s877_s29 }
  0x83   : > { %694 = vmatpush3.bf16.msra.mxu0 %v773_v13  ;;  %p875_p7 = pnand %p874_p3, %p1070_p12  ;;  %s879_s0 = scalar_lea.vmem %s878_s29, 1024 }
  0x84   : > { %695 = vmatprep.subr.bf16.mxu0 %v774_v14  ;;  %p880_p1 = scmp.lt.s32.totalorder %s1184_s28, %s878_s29  ;;  %p881_p5 = scmp.lt.s32.totalorder %s879_s0, %s873_s6 }
  0x85   : > { %409 = vadd.xlane.f32.xlu1 %v408_v11  ;;  %403 = vadd.xlane.f32.xlu0 %v402_v12  ;;  %p876_p9 = pneg %p875_p7 }
  0x86   : > { %p882_p2 = por %p881_p5, %p880_p1 }
  0x87   : > { %696 = vmatpush3.bf16.msra.mxu0 %v774_v14 }
  0x88   : > { %p883_p6 = pnand %p882_p2, %p876_p9 }
 0x10e   : > { %v401_v15 = vpop.xlane.xlu0 %400  ;;  %v407_v16 = vpop.xlane.xlu1 %406 }
 0x10f   : > { %v413_v19 = vadd.f32 1.0, %v407_v16  ;;  %v411_v22 = vadd.f32 1.0, %v401_v15 }
 0x111   : > { %777 = vrcp.f32 %v413_v19 }
 0x112   : > { %v404_v17 = vpop.xlane.xlu0 %403  ;;  %v410_v18 = vpop.xlane.xlu1 %409 }
 0x113   : > { %v412_v20 = vadd.f32 1.0, %v404_v17  ;;  %v414_v21 = vadd.f32 1.0, %v410_v18 }
 0x115   : > { %779 = vrcp.f32 %v412_v20 }
 0x116   : > { %781 = vrcp.f32 %v414_v21 }
 0x117   : > { %783 = vrcp.f32 %v411_v22 }
 0x11b   : > { %v778_v23 = vpop.eup %777 }
 0x11f   : > { %v780_v24 = vpop.eup %779 }
 0x120   : > { %v782_v26 = vpop.eup %781 }
 0x121   : > { %v784_v29 = vpop.eup %783 }
 0x155   : > { %v333_v25 = vpop.f32.mrb[0].mxu0  ;;  %v388_v27 = vpop.f32.mrb[0].mxu1 }
 0x156   : > { %v685_v28 = vpop.f32.mrb[1].mxu0  ;;  %v691_v30 = vpop.f32.mrb[1].mxu1  ;;  %v424_v32 = vmul.f32 %v784_v29, %v333_v25  ;;  %v426_v36 = vmul.f32 %v778_v23, %v388_v27 }
 0x157   : > { %v336_v31 = vpop.f32.mrb[2].mxu0  ;;  %v391_v34 = vpop.f32.mrb[2].mxu1 }
 0x158   : > { %v425_v33 = vmul.f32 %v780_v24, %v336_v31  ;;  %v686_v35 = vpop.f32.mrb[3].mxu0  ;;  %v427_v37 = vmul.f32 %v782_v26, %v391_v34  ;;  %v692_v38 = vpop.f32.mrb[3].mxu1 }
 0x15a   : > { %v428_v39 = vpack.c.bf16 %v425_v33, %v424_v32  ;;  %v429_v40 = vpack.c.bf16 %v427_v37, %v426_v36 }
 0x15c   : > { %697 = vmatprep.mubr.msk.bf16.mxu0 %vm442_vm2, %v428_v39 }
 0x15d   : > { %698 = vmatmul.mubr.msk.bf16.vlgmr.msra.gmra.mrb[4].mxu0 %vm442_vm2, %v429_v40 }
 0x230   : > { %v699_v42 = vpop.f32.mrb[4].mxu0 }
 0x231   : > { %v506_v43 = vadd.f32 %v699_v42, %v660_v41  ;;  %v483_v44 = vpop.f32.mrb[5].mxu0 }
 0x232   : > { %v504_v45 = vadd.f32 %v660_v41, %v483_v44  ;;  %v700_v46 = vpop.f32.mrb[6].mxu0 }
 0x233   : > { %511 = vst.msk [vmem:[%s271_s7 + $0x10] sm:$0xff] %vm508_vm3, %v506_v43  ;;  %v507_v47 = vadd.f32 %v700_v46, %v660_v41  ;;  %v486_v48 = vpop.f32.mrb[7].mxu0 }
 0x234   : > { %509 = vst.msk [vmem:[%s271_s7] sm:$0xff] %vm508_vm3, %v504_v45  ;;  %v505_v49 = vadd.f32 %v660_v41, %v486_v48 }
 0x235   : > { %512 = vst.msk [vmem:[%s271_s7 + $0x18] sm:$0xff] %vm508_vm3, %v507_v47 }
 0x236   : > { %510 = vst.msk [vmem:[%s271_s7 + $0x8] sm:$0xff] %vm508_vm3, %v505_v49 }
 0x237   : > { %886 = shalt.err (!%p883_p6)
}
 0x238   : > { %s887_s20 = scalar_lea.hbm %s1189_s2, 512  ;;  %s891_s9 = scalar_lea.hbm %s1236_s4, 2048 }
 0x239   : > { %p888_p8 = scmp.ne.s32.totalorder %s1189_s2, %s887_s20  ;;  %p892_p4 = scmp.lt.u32.totalorder %s1189_s2, %s1236_s4 }
 0x23a   : > { %p893_p10 = scmp.lt.u32.totalorder %s891_s9, %s887_s20  ;;  %p895_p3 = scmp.lt.u32.totalorder %s887_s20, %s1189_s2 }
 0x23b   : > { %p889_p11 = pnand %p888_p8, %p1070_p12 }
 0x23c   : > { %p894_p13 = por %p893_p10, %p892_p4 }
 0x23d   : > { %p890_p0 = pneg %p889_p11 }
 0x23e   : > { %p896_p7 = por %p895_p3, %p894_p13 }
 0x240   : > { %p897_p9 = pnand %p896_p7, %p890_p0 }
 0x242   : > { %900 = shalt.err (!%p897_p9)
}
 0x243   : > { %s957_s21 = smov 128   ;;  %s958_s12 = smov 8  }
 0x244   : > { %709 = dma.vmem_to_hbm [thread:$0]  (%p1070_p12), %s1184_s28, 512, %s1189_s2, %s514_s19, %s957_s21, %s957_s21, %s958_s12  }
 0x245 PF: > { %p729_p1 = scmp.ge.s32.totalorder %s947_s18, 2  ;;  %s543_s13 = sand.u32 1, %s935_s15  }
 0x246   : > { %p1262_p5 = scmp.ne.s32.totalorder %s1247_s22, 0  ;;  %s544_s7 = scalar_lea.sflag [#allocation4], %s543_s13 }
 0x248   : > { %p723_p2 = pnand %p729_p1, %p1262_p5 }
 0x24a   : > { %930 = dma.done.wait (!%p723_p2), %s544_s7, 512  }
 0x24b   : > { %932 = vsyncadd (!%p723_p2), %s544_s7, 4294966784  ;;  %s1263_s26 = sld [smem:[#allocation13_spill]]  ;;  %p20_p6 = scmp.ge.s32.totalorder %s1037_s27, 6  }
 0x24c   : > { %s1264_s15 = smov %s939_s16  ;;  %s1265_s16 = smov %s943_s17 }
 0x24d   : > { %s1267_s18 = smov %s1037_s27  ;;  %22 = sbr.rel (!%p20_p6) target bundleno = 10 (0xa), region = 98 }
 0x251   : > { %s1266_s17 = smov %s1263_s26 }
 0x254   :  { %549 = vsyncpa [#allocation3], 1 }
 0x255   :  { %551 = vsyncpa [#allocation3 + $0x1], 1 }
 0x256   :  { %552 = vsyncpa [#allocation6], 1 }
 0x257   :  { %554 = vsyncpa [#allocation6 + $0x1], 1 }
 0x258   :  { %555 = vsyncpa [#allocation4], 1 }
 0x259   :  { %557 = vsyncpa [#allocation4 + $0x1], 1 }

</bundles_post_ra>
